<compile_context>
chip_gen: v6e
topology: v6e:2x2x1
jax: 0.10.0
libtpu: 0.0.40
codegen_flags: <defaults>
</compile_context>

<pallas_src>
import functools

import jax
import jax.numpy as jnp
from jax.experimental import pallas as pl
from jax.experimental.pallas import tpu as pltpu

# ---- model hyperparameters ("config") ----
INPUT_SIZE = 16      # config['input_size']
HIDDEN_SIZE = 32     # config['hidden_size']
NUM_HEADS = 4        # config['num_heads']   (head_size = 8)
OUTPUT_SIZE = 8
LN_EPS = 1e-5
NEG_BIG = -1e30      # cross-head attention mask value (exp underflows to 0)
SLAB_W = 128         # lane width of the packed parameter slab


def _slab_layout(D, H, B, S, nH, O):
    """Row layout of the single packed (rows, 128) f32 parameter slab."""
    lay = {}
    r = 0

    def add(name, nrows, ncols):
        nonlocal r
        assert ncols <= SLAB_W
        lay[name] = (r, nrows, ncols)
        r += ((nrows + 7) // 8) * 8          # keep every section 8-row aligned

    add("w_hh", H, 4 * H)           # LSTM recurrent weight (H,4H), i/f/o cols *0.5
    add("w_ih", D, 4 * H)           # LSTM input weight (D,4H), i/f/o cols *0.5
    add("b_lstm", 1, 4 * H)         # b_ih + b_hh, i/f/o *0.5
    add("perm", S * B, S * B)       # 0/1 batch-major -> time-major permutation
    add("wqkv", H, 3 * H)           # fused per-head Q|K|V weights (head-in-lane)
    add("mask_qkv", nH * B, 3 * H)  # 0/1 head-selection mask for widened rows
    add("w_lin", H, O)              # final linear weight (H, O)
    add("gamma", 1, D)              # LayerNorm scale
    add("beta", 1, D)               # LayerNorm shift
    add("rep", nH * B, B)           # 0/1 replication: h -> one row per (head,batch)
    add("attn_mask", nH * B, nH * B)  # 0 same-head blocks / -1e30 cross-head
    add("summat", B, nH * B)        # 0/1 head-sum matrix (rows back to (B,H))
    add("b_lin", 1, O)
    return lay, r


def _erf_f32(x):
    # Abramowitz & Stegun 7.1.26 (|err| ~1.5e-7).  Exact divide (no approx
    # reciprocal) so GELU stays tight against the PyTorch erf reference.
    p = 0.3275911
    a1, a2, a3, a4, a5 = (0.254829592, -0.284496736, 1.421413741,
                          -1.453152027, 1.061405429)
    z = jnp.abs(x)
    t = 1.0 / (1.0 + p * z)
    t2 = t * t
    # Estrin-style split: shorter dependent VALU chain than pure Horner.
    poly = (a1 * t + a2 * t2) + (t * t2) * ((a3 + a4 * t) + a5 * t2)
    y = 1.0 - poly * jnp.exp(-z * z)
    return jnp.where(x >= 0.0, y, -y)


def _gelu_exact(x):
    # nn.GELU() default (approximate='none'): 0.5 * x * (1 + erf(x / sqrt(2)))
    return 0.5 * x * (1.0 + _erf_f32(x * 0.7071067811865476))


def classifier_kernel(x_ref, p_ref, out_ref, *, batch, hidden, num_heads, out_dim):
    SB, D = x_ref.shape
    B, H, nH, O = batch, hidden, num_heads, out_dim
    S = SB // B
    hd = H // nH
    lay, _ = _slab_layout(D, H, B, S, nH, O)

    def rd(name):
        r0, n, c = lay[name]
        return p_ref[r0:r0 + n, 0:c]

    x2 = x_ref[...]                                   # (B*S, D), batch-major rows b*S+t

    # ---- nn.LayerNorm(input_size), eps=1e-5, biased variance ----
    mean = jnp.mean(x2, axis=-1, keepdims=True)
    var = jnp.mean(jnp.square(x2 - mean), axis=-1, keepdims=True)
    xn = (x2 - mean) * jax.lax.rsqrt(var + LN_EPS) * rd("gamma") + rd("beta")

    # batch-major -> time-major rows (t*B + b) via a 0/1 permutation matmul
    # (replaces the wrapper-side XLA transpose; exact since perm is 0/1).
    xn_tm = jnp.dot(rd("perm"), xn, preferred_element_type=jnp.float32)

    # ---- nn.LSTM(D, H, batch_first=True); only h_n is needed ----
    # Input projection hoisted out of the recurrence; bf16 operands (f32 acc)
    # keep each of the strictly-serial matmuls a single MXU pass.
    xg = (jnp.dot(xn_tm.astype(jnp.bfloat16), rd("w_ih").astype(jnp.bfloat16),
                  preferred_element_type=jnp.float32)
          + rd("b_lstm"))                             # (S*B, 4H), gate order i,f,g,o
    w_hh = rd("w_hh").astype(jnp.bfloat16)            # (H, 4H)

    h = jnp.zeros((B, H), jnp.float32)
    c = jnp.zeros((B, H), jnp.float32)
    for t in range(S):                                # S=8 static -> unrolled
        z = xg[t * B:(t + 1) * B, :] + jnp.dot(
            h.astype(jnp.bfloat16), w_hh, preferred_element_type=jnp.float32)
        # i/f/o columns were pre-scaled by 0.5 at init, so ONE full-width tanh
        # gives every gate: sigmoid(z) = 0.5*tanh(z/2) + 0.5 ; g = tanh(z_g).
        th = jnp.tanh(z)                              # one EUP launch per step
        sg = 0.5 * th + 0.5
        i_g = sg[:, 0 * H:1 * H]
        f_g = sg[:, 1 * H:2 * H]
        g_g = th[:, 2 * H:3 * H]
        o_g = sg[:, 3 * H:4 * H]
        c = f_g * c + i_g * g_g
        h = o_g * jnp.tanh(c)                         # second (unavoidable) EUP launch

    # ---- MultiHeadAttention over h_n (attention "sequence" length == B) ----
    # All heads fused: one row per (head, batch).  Replication, head masking,
    # and head recombination are matmuls / one multiply against precomputed
    # 0/1 matrices (no slice+concat relayouts on the serial chain).
    hr = jnp.dot(rd("rep"), h, preferred_element_type=jnp.float32)      # (nH*B, H)
    qkv = jnp.dot(hr, rd("wqkv"), preferred_element_type=jnp.float32)   # (nH*B, 3H)
    qkv = qkv * rd("mask_qkv")                 # keep only this row's head lanes
    q = qkv[:, 0:H]
    k = qkv[:, H:2 * H]
    v = qkv[:, 2 * H:3 * H]

    scores = jax.lax.dot_general(
        q, k, (((1,), (1,)), ((), ())),
        preferred_element_type=jnp.float32) * (1.0 / float(hd) ** 0.5)  # (nH*B, nH*B)
    scores = scores + rd("attn_mask")          # 0 same-head / -1e30 cross-head
    m = jnp.max(scores, axis=-1, keepdims=True)
    e = jnp.exp(scores - m)
    attn = e * pl.reciprocal(jnp.sum(e, axis=-1, keepdims=True), approx=True)
    ctx = jnp.dot(attn, v, preferred_element_type=jnp.float32)          # (nH*B, H)
    # collapse head-major rows back to (B, H) == torch.cat([head(x)], dim=-1)
    ctx_bh = jnp.dot(rd("summat"), ctx, preferred_element_type=jnp.float32)

    # ---- GELU -> Dropout(eval = identity) -> Linear ----
    # TODO(synk): train-mode dropout masking not implemented (inference semantics).
    gel = _gelu_exact(ctx_bh)
    logits = (jnp.dot(gel, rd("w_lin"), preferred_element_type=jnp.float32)
              + rd("b_lin"))                                            # (B, O)

    # nn.Softmax(1) on the (1, B, O) tensor -> softmax over the batch axis.
    # Exact divide: keeps the output exactly normalized (off the hot path).
    mm = jnp.max(logits, axis=0, keepdims=True)
    ee = jnp.exp(logits - mm)
    out_ref[...] = ee / jnp.sum(ee, axis=0, keepdims=True)


@jax.jit
def classifier_forward(x, slab):
    B, S, D = x.shape
    # Leading-dim collapse only (bitcast, no data movement / no extra copy op).
    x2 = x.reshape(B * S, D)
    out = pl.pallas_call(
        functools.partial(classifier_kernel, batch=B, hidden=HIDDEN_SIZE,
                          num_heads=NUM_HEADS, out_dim=OUTPUT_SIZE),
        out_shape=jax.ShapeDtypeStruct((B, OUTPUT_SIZE), jnp.float32),
        in_specs=[pl.BlockSpec(memory_space=pltpu.MemorySpace.VMEM),
                  pl.BlockSpec(memory_space=pltpu.MemorySpace.VMEM)],
        out_specs=pl.BlockSpec(memory_space=pltpu.MemorySpace.VMEM),
    )(x2, slab)
    # PyTorch returns (1, B, O) because attention runs on h_n (1, B, H);
    # adding the unit leading dim is a metadata-only reshape.
    return out[None, :, :]


def init_params(key, input_size, hidden_size, output_size, num_heads,
                batch_size, seq_len):
    D, H, O, nH, B, S = (input_size, hidden_size, output_size, num_heads,
                         batch_size, seq_len)
    assert H % nH == 0
    hd = H // nH
    ks = jax.random.split(key, 9)

    def u(k, shape, scale):
        return jax.random.uniform(k, shape, jnp.float32, -scale, scale)

    s = 1.0 / (H ** 0.5)
    # PyTorch-native parameter shapes:
    w_ih = u(ks[0], (4 * H, D), s)       # lstm.weight_ih_l0 (gate order i,f,g,o)
    w_hh = u(ks[1], (4 * H, H), s)       # lstm.weight_hh_l0
    b_ih = u(ks[2], (4 * H,), s)
    b_hh = u(ks[3], (4 * H,), s)
    wq = u(ks[4], (nH, hd, H), s)        # per-head query weights (bias-free)
    wk = u(ks[5], (nH, hd, H), s)
    wv = u(ks[6], (nH, hd, H), s)
    w_lin = u(ks[7], (O, H), s)
    b_lin = u(ks[8], (O,), s)

    # Fold the sigmoid->tanh 0.5 pre-scale into the i/f/o gate columns.
    col_scale = jnp.concatenate([jnp.full((H,), 0.5, jnp.float32),
                                 jnp.full((H,), 0.5, jnp.float32),
                                 jnp.ones((H,), jnp.float32),
                                 jnp.full((H,), 0.5, jnp.float32)])
    w_ih_t = w_ih.T * col_scale[None, :]                 # (D, 4H)
    w_hh_t = w_hh.T * col_scale[None, :]                 # (H, 4H)
    b_lstm = ((b_ih + b_hh) * col_scale)[None, :]        # (1, 4H)

    def stack_heads(w):
        # (nH, hd, H) -> (H, nH*hd): column hh*hd+d == row d of head hh's weight,
        # matching torch.cat([head(x) for head in heads], dim=-1).
        return jnp.transpose(w, (2, 0, 1)).reshape(H, nH * hd)

    wqkv = jnp.concatenate([stack_heads(wq), stack_heads(wk), stack_heads(wv)],
                           axis=1)                       # (H, 3H)

    # Constant 0/1 matrices for the fused block attention / layout plumbing.
    row_head = jnp.arange(nH * B) // B
    col_head3 = (jnp.arange(3 * H) % H) // hd
    mask_qkv = (row_head[:, None] == col_head3[None, :]).astype(jnp.float32)
    attn_mask = jnp.where(row_head[:, None] == row_head[None, :],
                          0.0, NEG_BIG).astype(jnp.float32)
    rep = jnp.tile(jnp.eye(B, dtype=jnp.float32), (nH, 1))      # (nH*B, B)
    summat = jnp.tile(jnp.eye(B, dtype=jnp.float32), (1, nH))   # (B, nH*B)
    rows_tm = jnp.arange(S * B)
    src = (rows_tm % B) * S + rows_tm // B               # time-major row <- batch-major row
    perm = (jnp.arange(S * B)[None, :] == src[:, None]).astype(jnp.float32)

    lay, total_rows = _slab_layout(D, H, B, S, nH, O)
    slab = jnp.zeros((total_rows, SLAB_W), jnp.float32)

    def put(sl, name, val):
        r0, n, c = lay[name]
        return sl.at[r0:r0 + n, 0:c].set(val.astype(jnp.float32))

    slab = put(slab, "w_hh", w_hh_t)
    slab = put(slab, "w_ih", w_ih_t)
    slab = put(slab, "b_lstm", b_lstm)
    slab = put(slab, "perm", perm)
    slab = put(slab, "wqkv", wqkv)
    slab = put(slab, "mask_qkv", mask_qkv)
    slab = put(slab, "w_lin", w_lin.T)
    slab = put(slab, "gamma", jnp.ones((1, D), jnp.float32))   # LayerNorm defaults
    slab = put(slab, "beta", jnp.zeros((1, D), jnp.float32))
    slab = put(slab, "rep", rep)
    slab = put(slab, "attn_mask", attn_mask)
    slab = put(slab, "summat", summat)
    slab = put(slab, "b_lin", b_lin[None, :])
    return slab


if __name__ == "__main__":
    key = jax.random.PRNGKey(0)
    k_x, k_p = jax.random.split(key)
    B, S = 2, 8
    x = jax.random.normal(k_x, (B, S, INPUT_SIZE), jnp.float32)
    slab = init_params(k_p, INPUT_SIZE, HIDDEN_SIZE, OUTPUT_SIZE, NUM_HEADS, B, S)

    y = classifier_forward(x, slab)
    jax.block_until_ready(y)
    assert y.shape == (1, B, OUTPUT_SIZE)
    # softmax over dim=1 -> columns sum to 1 across the batch axis
    assert jnp.allclose(jnp.sum(y, axis=1), 1.0, atol=1e-5)
    print("KERNEL_OK")
</pallas_src>

<mosaic_0001>
module attributes {stable_mosaic.version = 11 : i64} {
  func.func @classifier_kernel(%arg0: memref<16x16xf32, #tpu.memory_space<vmem>>, %arg1: memref<192x128xf32, #tpu.memory_space<vmem>>, %arg2: memref<2x8xf32, #tpu.memory_space<vmem>>) attributes {dimension_semantics = [], scalar_prefetch = 0 : i64, scratch_operands = 0 : i64, tpu.core_type = #tpu.core_type<tc>} {
    %c0 = arith.constant 0 : index
    %c0_0 = arith.constant 0 : index
    %0 = vector.load %arg0[%c0, %c0_0] : memref<16x16xf32, #tpu.memory_space<vmem>>, vector<16x16xf32>
    %cst = arith.constant dense<0.000000e+00> : vector<16xf32>
    %1 = vector.multi_reduction <add>, %0, %cst [1] : vector<16x16xf32> to vector<16xf32>
    %2 = vector.shape_cast %1 : vector<16xf32> to vector<16x1xf32>
    %cst_1 = arith.constant 1.600000e+01 : f32
    %3 = vector.broadcast %cst_1 : f32 to vector<16x1xf32>
    %4 = arith.divf %2, %3 : vector<16x1xf32>
    %5 = vector.broadcast %4 : vector<16x1xf32> to vector<16x16xf32>
    %6 = arith.subf %0, %5 : vector<16x16xf32>
    %7 = arith.mulf %6, %6 : vector<16x16xf32>
    %cst_2 = arith.constant dense<0.000000e+00> : vector<16xf32>
    %8 = vector.multi_reduction <add>, %7, %cst_2 [1] : vector<16x16xf32> to vector<16xf32>
    %9 = vector.shape_cast %8 : vector<16xf32> to vector<16x1xf32>
    %cst_3 = arith.constant 1.600000e+01 : f32
    %10 = vector.broadcast %cst_3 : f32 to vector<16x1xf32>
    %11 = arith.divf %9, %10 : vector<16x1xf32>
    %12 = vector.broadcast %4 : vector<16x1xf32> to vector<16x16xf32>
    %13 = arith.subf %0, %12 : vector<16x16xf32>
    %cst_4 = arith.constant 9.99999974E-6 : f32
    %14 = vector.broadcast %cst_4 : f32 to vector<16x1xf32>
    %15 = arith.addf %11, %14 : vector<16x1xf32>
    %16 = math.rsqrt %15 : vector<16x1xf32>
    %17 = vector.broadcast %16 : vector<16x1xf32> to vector<16x16xf32>
    %18 = arith.mulf %13, %17 : vector<16x16xf32>
    %c144 = arith.constant 144 : index
    %c0_5 = arith.constant 0 : index
    %19 = vector.load %arg1[%c144, %c0_5] : memref<192x128xf32, #tpu.memory_space<vmem>>, vector<1x16xf32>
    %20 = vector.broadcast %19 : vector<1x16xf32> to vector<16x16xf32>
    %21 = arith.mulf %18, %20 : vector<16x16xf32>
    %c152 = arith.constant 152 : index
    %c0_6 = arith.constant 0 : index
    %22 = vector.load %arg1[%c152, %c0_6] : memref<192x128xf32, #tpu.memory_space<vmem>>, vector<1x16xf32>
    %23 = vector.broadcast %22 : vector<1x16xf32> to vector<16x16xf32>
    %24 = arith.addf %21, %23 : vector<16x16xf32>
    %c56 = arith.constant 56 : index
    %c0_7 = arith.constant 0 : index
    %25 = vector.load %arg1[%c56, %c0_7] : memref<192x128xf32, #tpu.memory_space<vmem>>, vector<16x16xf32>
    %cst_8 = arith.constant dense<0.000000e+00> : vector<16x16xf32>
    %26 = tpu.matmul %25, %24, %cst_8 {dimension_numbers = #tpu.dot_dimension_numbers<[1], [0], [0], [1], [0, 0, 1, 1], [], []>} : vector<16x16xf32>, vector<16x16xf32>, vector<16x16xf32> -> vector<16x16xf32>
    %27 = arith.truncf %26 : vector<16x16xf32> to vector<16x16xbf16>
    %c32 = arith.constant 32 : index
    %c0_9 = arith.constant 0 : index
    %28 = vector.load %arg1[%c32, %c0_9] : memref<192x128xf32, #tpu.memory_space<vmem>>, vector<16x128xf32>
    %29 = arith.truncf %28 : vector<16x128xf32> to vector<16x128xbf16>
    %cst_10 = arith.constant dense<0.000000e+00> : vector<16x128xf32>
    %30 = tpu.matmul %27, %29, %cst_10 {dimension_numbers = #tpu.dot_dimension_numbers<[1], [0], [0], [1], [0, 0, 1, 1], [], []>} : vector<16x16xbf16>, vector<16x128xbf16>, vector<16x128xf32> -> vector<16x128xf32>
    %c48 = arith.constant 48 : index
    %c0_11 = arith.constant 0 : index
    %31 = vector.load %arg1[%c48, %c0_11] : memref<192x128xf32, #tpu.memory_space<vmem>>, vector<1x128xf32>
    %32 = vector.broadcast %31 : vector<1x128xf32> to vector<16x128xf32>
    %33 = arith.addf %30, %32 : vector<16x128xf32>
    %c0_12 = arith.constant 0 : index
    %c0_13 = arith.constant 0 : index
    %34 = vector.load %arg1[%c0_12, %c0_13] : memref<192x128xf32, #tpu.memory_space<vmem>>, vector<32x128xf32>
    %35 = arith.truncf %34 : vector<32x128xf32> to vector<32x128xbf16>
    %cst_14 = arith.constant 0.000000e+00 : f32
    %36 = vector.broadcast %cst_14 : f32 to vector<2x32xf32>
    %cst_15 = arith.constant 0.000000e+00 : f32
    %37 = vector.broadcast %cst_15 : f32 to vector<2x32xf32>
    %38 = vector.extract_strided_slice %33 {offsets = [0, 0], sizes = [2, 128], strides = [1, 1]} : vector<16x128xf32> to vector<2x128xf32>
    %39 = arith.truncf %36 : vector<2x32xf32> to vector<2x32xbf16>
    %cst_16 = arith.constant dense<0.000000e+00> : vector<2x128xf32>
    %40 = tpu.matmul %39, %35, %cst_16 {dimension_numbers = #tpu.dot_dimension_numbers<[1], [0], [0], [1], [0, 0, 1, 1], [], []>} : vector<2x32xbf16>, vector<32x128xbf16>, vector<2x128xf32> -> vector<2x128xf32>
    %41 = arith.addf %38, %40 : vector<2x128xf32>
    %42 = math.tanh %41 : vector<2x128xf32>
    %cst_17 = arith.constant 5.000000e-01 : f32
    %43 = vector.broadcast %cst_17 : f32 to vector<2x128xf32>
    %44 = arith.mulf %43, %42 : vector<2x128xf32>
    %cst_18 = arith.constant 5.000000e-01 : f32
    %45 = vector.broadcast %cst_18 : f32 to vector<2x128xf32>
    %46 = arith.addf %44, %45 : vector<2x128xf32>
    %47 = vector.extract_strided_slice %46 {offsets = [0, 0], sizes = [2, 32], strides = [1, 1]} : vector<2x128xf32> to vector<2x32xf32>
    %48 = vector.extract_strided_slice %46 {offsets = [0, 32], sizes = [2, 32], strides = [1, 1]} : vector<2x128xf32> to vector<2x32xf32>
    %49 = vector.extract_strided_slice %42 {offsets = [0, 64], sizes = [2, 32], strides = [1, 1]} : vector<2x128xf32> to vector<2x32xf32>
    %50 = vector.extract_strided_slice %46 {offsets = [0, 96], sizes = [2, 32], strides = [1, 1]} : vector<2x128xf32> to vector<2x32xf32>
    %51 = arith.mulf %48, %37 : vector<2x32xf32>
    %52 = arith.mulf %47, %49 : vector<2x32xf32>
    %53 = arith.addf %51, %52 : vector<2x32xf32>
    %54 = math.tanh %53 : vector<2x32xf32>
    %55 = arith.mulf %50, %54 : vector<2x32xf32>
    %56 = vector.extract_strided_slice %33 {offsets = [2, 0], sizes = [2, 128], strides = [1, 1]} : vector<16x128xf32> to vector<2x128xf32>
    %57 = arith.truncf %55 : vector<2x32xf32> to vector<2x32xbf16>
    %cst_19 = arith.constant dense<0.000000e+00> : vector<2x128xf32>
    %58 = tpu.matmul %57, %35, %cst_19 {dimension_numbers = #tpu.dot_dimension_numbers<[1], [0], [0], [1], [0, 0, 1, 1], [], []>} : vector<2x32xbf16>, vector<32x128xbf16>, vector<2x128xf32> -> vector<2x128xf32>
    %59 = arith.addf %56, %58 : vector<2x128xf32>
    %60 = math.tanh %59 : vector<2x128xf32>
    %cst_20 = arith.constant 5.000000e-01 : f32
    %61 = vector.broadcast %cst_20 : f32 to vector<2x128xf32>
    %62 = arith.mulf %61, %60 : vector<2x128xf32>
    %cst_21 = arith.constant 5.000000e-01 : f32
    %63 = vector.broadcast %cst_21 : f32 to vector<2x128xf32>
    %64 = arith.addf %62, %63 : vector<2x128xf32>
    %65 = vector.extract_strided_slice %64 {offsets = [0, 0], sizes = [2, 32], strides = [1, 1]} : vector<2x128xf32> to vector<2x32xf32>
    %66 = vector.extract_strided_slice %64 {offsets = [0, 32], sizes = [2, 32], strides = [1, 1]} : vector<2x128xf32> to vector<2x32xf32>
    %67 = vector.extract_strided_slice %60 {offsets = [0, 64], sizes = [2, 32], strides = [1, 1]} : vector<2x128xf32> to vector<2x32xf32>
    %68 = vector.extract_strided_slice %64 {offsets = [0, 96], sizes = [2, 32], strides = [1, 1]} : vector<2x128xf32> to vector<2x32xf32>
    %69 = arith.mulf %66, %53 : vector<2x32xf32>
    %70 = arith.mulf %65, %67 : vector<2x32xf32>
    %71 = arith.addf %69, %70 : vector<2x32xf32>
    %72 = math.tanh %71 : vector<2x32xf32>
    %73 = arith.mulf %68, %72 : vector<2x32xf32>
    %74 = vector.extract_strided_slice %33 {offsets = [4, 0], sizes = [2, 128], strides = [1, 1]} : vector<16x128xf32> to vector<2x128xf32>
    %75 = arith.truncf %73 : vector<2x32xf32> to vector<2x32xbf16>
    %cst_22 = arith.constant dense<0.000000e+00> : vector<2x128xf32>
    %76 = tpu.matmul %75, %35, %cst_22 {dimension_numbers = #tpu.dot_dimension_numbers<[1], [0], [0], [1], [0, 0, 1, 1], [], []>} : vector<2x32xbf16>, vector<32x128xbf16>, vector<2x128xf32> -> vector<2x128xf32>
    %77 = arith.addf %74, %76 : vector<2x128xf32>
    %78 = math.tanh %77 : vector<2x128xf32>
    %cst_23 = arith.constant 5.000000e-01 : f32
    %79 = vector.broadcast %cst_23 : f32 to vector<2x128xf32>
    %80 = arith.mulf %79, %78 : vector<2x128xf32>
    %cst_24 = arith.constant 5.000000e-01 : f32
    %81 = vector.broadcast %cst_24 : f32 to vector<2x128xf32>
    %82 = arith.addf %80, %81 : vector<2x128xf32>
    %83 = vector.extract_strided_slice %82 {offsets = [0, 0], sizes = [2, 32], strides = [1, 1]} : vector<2x128xf32> to vector<2x32xf32>
    %84 = vector.extract_strided_slice %82 {offsets = [0, 32], sizes = [2, 32], strides = [1, 1]} : vector<2x128xf32> to vector<2x32xf32>
    %85 = vector.extract_strided_slice %78 {offsets = [0, 64], sizes = [2, 32], strides = [1, 1]} : vector<2x128xf32> to vector<2x32xf32>
    %86 = vector.extract_strided_slice %82 {offsets = [0, 96], sizes = [2, 32], strides = [1, 1]} : vector<2x128xf32> to vector<2x32xf32>
    %87 = arith.mulf %84, %71 : vector<2x32xf32>
    %88 = arith.mulf %83, %85 : vector<2x32xf32>
    %89 = arith.addf %87, %88 : vector<2x32xf32>
    %90 = math.tanh %89 : vector<2x32xf32>
    %91 = arith.mulf %86, %90 : vector<2x32xf32>
    %92 = vector.extract_strided_slice %33 {offsets = [6, 0], sizes = [2, 128], strides = [1, 1]} : vector<16x128xf32> to vector<2x128xf32>
    %93 = arith.truncf %91 : vector<2x32xf32> to vector<2x32xbf16>
    %cst_25 = arith.constant dense<0.000000e+00> : vector<2x128xf32>
    %94 = tpu.matmul %93, %35, %cst_25 {dimension_numbers = #tpu.dot_dimension_numbers<[1], [0], [0], [1], [0, 0, 1, 1], [], []>} : vector<2x32xbf16>, vector<32x128xbf16>, vector<2x128xf32> -> vector<2x128xf32>
    %95 = arith.addf %92, %94 : vector<2x128xf32>
    %96 = math.tanh %95 : vector<2x128xf32>
    %cst_26 = arith.constant 5.000000e-01 : f32
    %97 = vector.broadcast %cst_26 : f32 to vector<2x128xf32>
    %98 = arith.mulf %97, %96 : vector<2x128xf32>
    %cst_27 = arith.constant 5.000000e-01 : f32
    %99 = vector.broadcast %cst_27 : f32 to vector<2x128xf32>
    %100 = arith.addf %98, %99 : vector<2x128xf32>
    %101 = vector.extract_strided_slice %100 {offsets = [0, 0], sizes = [2, 32], strides = [1, 1]} : vector<2x128xf32> to vector<2x32xf32>
    %102 = vector.extract_strided_slice %100 {offsets = [0, 32], sizes = [2, 32], strides = [1, 1]} : vector<2x128xf32> to vector<2x32xf32>
    %103 = vector.extract_strided_slice %96 {offsets = [0, 64], sizes = [2, 32], strides = [1, 1]} : vector<2x128xf32> to vector<2x32xf32>
    %104 = vector.extract_strided_slice %100 {offsets = [0, 96], sizes = [2, 32], strides = [1, 1]} : vector<2x128xf32> to vector<2x32xf32>
    %105 = arith.mulf %102, %89 : vector<2x32xf32>
    %106 = arith.mulf %101, %103 : vector<2x32xf32>
    %107 = arith.addf %105, %106 : vector<2x32xf32>
    %108 = math.tanh %107 : vector<2x32xf32>
    %109 = arith.mulf %104, %108 : vector<2x32xf32>
    %110 = vector.extract_strided_slice %33 {offsets = [8, 0], sizes = [2, 128], strides = [1, 1]} : vector<16x128xf32> to vector<2x128xf32>
    %111 = arith.truncf %109 : vector<2x32xf32> to vector<2x32xbf16>
    %cst_28 = arith.constant dense<0.000000e+00> : vector<2x128xf32>
    %112 = tpu.matmul %111, %35, %cst_28 {dimension_numbers = #tpu.dot_dimension_numbers<[1], [0], [0], [1], [0, 0, 1, 1], [], []>} : vector<2x32xbf16>, vector<32x128xbf16>, vector<2x128xf32> -> vector<2x128xf32>
    %113 = arith.addf %110, %112 : vector<2x128xf32>
    %114 = math.tanh %113 : vector<2x128xf32>
    %cst_29 = arith.constant 5.000000e-01 : f32
    %115 = vector.broadcast %cst_29 : f32 to vector<2x128xf32>
    %116 = arith.mulf %115, %114 : vector<2x128xf32>
    %cst_30 = arith.constant 5.000000e-01 : f32
    %117 = vector.broadcast %cst_30 : f32 to vector<2x128xf32>
    %118 = arith.addf %116, %117 : vector<2x128xf32>
    %119 = vector.extract_strided_slice %118 {offsets = [0, 0], sizes = [2, 32], strides = [1, 1]} : vector<2x128xf32> to vector<2x32xf32>
    %120 = vector.extract_strided_slice %118 {offsets = [0, 32], sizes = [2, 32], strides = [1, 1]} : vector<2x128xf32> to vector<2x32xf32>
    %121 = vector.extract_strided_slice %114 {offsets = [0, 64], sizes = [2, 32], strides = [1, 1]} : vector<2x128xf32> to vector<2x32xf32>
    %122 = vector.extract_strided_slice %118 {offsets = [0, 96], sizes = [2, 32], strides = [1, 1]} : vector<2x128xf32> to vector<2x32xf32>
    %123 = arith.mulf %120, %107 : vector<2x32xf32>
    %124 = arith.mulf %119, %121 : vector<2x32xf32>
    %125 = arith.addf %123, %124 : vector<2x32xf32>
    %126 = math.tanh %125 : vector<2x32xf32>
    %127 = arith.mulf %122, %126 : vector<2x32xf32>
    %128 = vector.extract_strided_slice %33 {offsets = [10, 0], sizes = [2, 128], strides = [1, 1]} : vector<16x128xf32> to vector<2x128xf32>
    %129 = arith.truncf %127 : vector<2x32xf32> to vector<2x32xbf16>
    %cst_31 = arith.constant dense<0.000000e+00> : vector<2x128xf32>
    %130 = tpu.matmul %129, %35, %cst_31 {dimension_numbers = #tpu.dot_dimension_numbers<[1], [0], [0], [1], [0, 0, 1, 1], [], []>} : vector<2x32xbf16>, vector<32x128xbf16>, vector<2x128xf32> -> vector<2x128xf32>
    %131 = arith.addf %128, %130 : vector<2x128xf32>
    %132 = math.tanh %131 : vector<2x128xf32>
    %cst_32 = arith.constant 5.000000e-01 : f32
    %133 = vector.broadcast %cst_32 : f32 to vector<2x128xf32>
    %134 = arith.mulf %133, %132 : vector<2x128xf32>
    %cst_33 = arith.constant 5.000000e-01 : f32
    %135 = vector.broadcast %cst_33 : f32 to vector<2x128xf32>
    %136 = arith.addf %134, %135 : vector<2x128xf32>
    %137 = vector.extract_strided_slice %136 {offsets = [0, 0], sizes = [2, 32], strides = [1, 1]} : vector<2x128xf32> to vector<2x32xf32>
    %138 = vector.extract_strided_slice %136 {offsets = [0, 32], sizes = [2, 32], strides = [1, 1]} : vector<2x128xf32> to vector<2x32xf32>
    %139 = vector.extract_strided_slice %132 {offsets = [0, 64], sizes = [2, 32], strides = [1, 1]} : vector<2x128xf32> to vector<2x32xf32>
    %140 = vector.extract_strided_slice %136 {offsets = [0, 96], sizes = [2, 32], strides = [1, 1]} : vector<2x128xf32> to vector<2x32xf32>
    %141 = arith.mulf %138, %125 : vector<2x32xf32>
    %142 = arith.mulf %137, %139 : vector<2x32xf32>
    %143 = arith.addf %141, %142 : vector<2x32xf32>
    %144 = math.tanh %143 : vector<2x32xf32>
    %145 = arith.mulf %140, %144 : vector<2x32xf32>
    %146 = vector.extract_strided_slice %33 {offsets = [12, 0], sizes = [2, 128], strides = [1, 1]} : vector<16x128xf32> to vector<2x128xf32>
    %147 = arith.truncf %145 : vector<2x32xf32> to vector<2x32xbf16>
    %cst_34 = arith.constant dense<0.000000e+00> : vector<2x128xf32>
    %148 = tpu.matmul %147, %35, %cst_34 {dimension_numbers = #tpu.dot_dimension_numbers<[1], [0], [0], [1], [0, 0, 1, 1], [], []>} : vector<2x32xbf16>, vector<32x128xbf16>, vector<2x128xf32> -> vector<2x128xf32>
    %149 = arith.addf %146, %148 : vector<2x128xf32>
    %150 = math.tanh %149 : vector<2x128xf32>
    %cst_35 = arith.constant 5.000000e-01 : f32
    %151 = vector.broadcast %cst_35 : f32 to vector<2x128xf32>
    %152 = arith.mulf %151, %150 : vector<2x128xf32>
    %cst_36 = arith.constant 5.000000e-01 : f32
    %153 = vector.broadcast %cst_36 : f32 to vector<2x128xf32>
    %154 = arith.addf %152, %153 : vector<2x128xf32>
    %155 = vector.extract_strided_slice %154 {offsets = [0, 0], sizes = [2, 32], strides = [1, 1]} : vector<2x128xf32> to vector<2x32xf32>
    %156 = vector.extract_strided_slice %154 {offsets = [0, 32], sizes = [2, 32], strides = [1, 1]} : vector<2x128xf32> to vector<2x32xf32>
    %157 = vector.extract_strided_slice %150 {offsets = [0, 64], sizes = [2, 32], strides = [1, 1]} : vector<2x128xf32> to vector<2x32xf32>
    %158 = vector.extract_strided_slice %154 {offsets = [0, 96], sizes = [2, 32], strides = [1, 1]} : vector<2x128xf32> to vector<2x32xf32>
    %159 = arith.mulf %156, %143 : vector<2x32xf32>
    %160 = arith.mulf %155, %157 : vector<2x32xf32>
    %161 = arith.addf %159, %160 : vector<2x32xf32>
    %162 = math.tanh %161 : vector<2x32xf32>
    %163 = arith.mulf %158, %162 : vector<2x32xf32>
    %164 = vector.extract_strided_slice %33 {offsets = [14, 0], sizes = [2, 128], strides = [1, 1]} : vector<16x128xf32> to vector<2x128xf32>
    %165 = arith.truncf %163 : vector<2x32xf32> to vector<2x32xbf16>
    %cst_37 = arith.constant dense<0.000000e+00> : vector<2x128xf32>
    %166 = tpu.matmul %165, %35, %cst_37 {dimension_numbers = #tpu.dot_dimension_numbers<[1], [0], [0], [1], [0, 0, 1, 1], [], []>} : vector<2x32xbf16>, vector<32x128xbf16>, vector<2x128xf32> -> vector<2x128xf32>
    %167 = arith.addf %164, %166 : vector<2x128xf32>
    %168 = math.tanh %167 : vector<2x128xf32>
    %cst_38 = arith.constant 5.000000e-01 : f32
    %169 = vector.broadcast %cst_38 : f32 to vector<2x128xf32>
    %170 = arith.mulf %169, %168 : vector<2x128xf32>
    %cst_39 = arith.constant 5.000000e-01 : f32
    %171 = vector.broadcast %cst_39 : f32 to vector<2x128xf32>
    %172 = arith.addf %170, %171 : vector<2x128xf32>
    %173 = vector.extract_strided_slice %172 {offsets = [0, 0], sizes = [2, 32], strides = [1, 1]} : vector<2x128xf32> to vector<2x32xf32>
    %174 = vector.extract_strided_slice %172 {offsets = [0, 32], sizes = [2, 32], strides = [1, 1]} : vector<2x128xf32> to vector<2x32xf32>
    %175 = vector.extract_strided_slice %168 {offsets = [0, 64], sizes = [2, 32], strides = [1, 1]} : vector<2x128xf32> to vector<2x32xf32>
    %176 = vector.extract_strided_slice %172 {offsets = [0, 96], sizes = [2, 32], strides = [1, 1]} : vector<2x128xf32> to vector<2x32xf32>
    %177 = arith.mulf %174, %161 : vector<2x32xf32>
    %178 = arith.mulf %173, %175 : vector<2x32xf32>
    %179 = arith.addf %177, %178 : vector<2x32xf32>
    %180 = math.tanh %179 : vector<2x32xf32>
    %181 = arith.mulf %176, %180 : vector<2x32xf32>
    %c160 = arith.constant 160 : index
    %c0_40 = arith.constant 0 : index
    %182 = vector.load %arg1[%c160, %c0_40] : memref<192x128xf32, #tpu.memory_space<vmem>>, vector<8x2xf32>
    %cst_41 = arith.constant dense<0.000000e+00> : vector<8x32xf32>
    %183 = tpu.matmul %182, %181, %cst_41 {dimension_numbers = #tpu.dot_dimension_numbers<[1], [0], [0], [1], [0, 0, 1, 1], [], []>} : vector<8x2xf32>, vector<2x32xf32>, vector<8x32xf32> -> vector<8x32xf32>
    %c72 = arith.constant 72 : index
    %c0_42 = arith.constant 0 : index
    %184 = vector.load %arg1[%c72, %c0_42] : memref<192x128xf32, #tpu.memory_space<vmem>>, vector<32x96xf32>
    %cst_43 = arith.constant dense<0.000000e+00> : vector<8x96xf32>
    %185 = tpu.matmul %183, %184, %cst_43 {dimension_numbers = #tpu.dot_dimension_numbers<[1], [0], [0], [1], [0, 0, 1, 1], [], []>} : vector<8x32xf32>, vector<32x96xf32>, vector<8x96xf32> -> vector<8x96xf32>
    %c104 = arith.constant 104 : index
    %c0_44 = arith.constant 0 : index
    %186 = vector.load %arg1[%c104, %c0_44] : memref<192x128xf32, #tpu.memory_space<vmem>>, vector<8x96xf32>
    %187 = arith.mulf %185, %186 : vector<8x96xf32>
    %188 = vector.extract_strided_slice %187 {offsets = [0, 0], sizes = [8, 32], strides = [1, 1]} : vector<8x96xf32> to vector<8x32xf32>
    %189 = vector.extract_strided_slice %187 {offsets = [0, 32], sizes = [8, 32], strides = [1, 1]} : vector<8x96xf32> to vector<8x32xf32>
    %190 = vector.extract_strided_slice %187 {offsets = [0, 64], sizes = [8, 32], strides = [1, 1]} : vector<8x96xf32> to vector<8x32xf32>
    %cst_45 = arith.constant dense<0.000000e+00> : vector<8x8xf32>
    %191 = tpu.matmul %188, %189, %cst_45 {dimension_numbers = #tpu.dot_dimension_numbers<[1], [1], [0], [0], [0, 0, 1, 0], [], []>} : vector<8x32xf32>, vector<8x32xf32>, vector<8x8xf32> -> vector<8x8xf32>
    %cst_46 = arith.constant 0.353553385 : f32
    %192 = vector.broadcast %cst_46 : f32 to vector<8x8xf32>
    %193 = arith.mulf %191, %192 : vector<8x8xf32>
    %c168 = arith.constant 168 : index
    %c0_47 = arith.constant 0 : index
    %194 = vector.load %arg1[%c168, %c0_47] : memref<192x128xf32, #tpu.memory_space<vmem>>, vector<8x8xf32>
    %195 = arith.addf %193, %194 : vector<8x8xf32>
    %cst_48 = arith.constant dense<0xFF800000> : vector<8xf32>
    %196 = vector.multi_reduction <maximumf>, %195, %cst_48 [1] : vector<8x8xf32> to vector<8xf32>
    %197 = vector.shape_cast %196 : vector<8xf32> to vector<8x1xf32>
    %198 = vector.broadcast %197 : vector<8x1xf32> to vector<8x8xf32>
    %199 = arith.subf %195, %198 : vector<8x8xf32>
    %200 = math.exp %199 : vector<8x8xf32>
    %cst_49 = arith.constant dense<0.000000e+00> : vector<8xf32>
    %201 = vector.multi_reduction <add>, %200, %cst_49 [1] : vector<8x8xf32> to vector<8xf32>
    %202 = vector.shape_cast %201 : vector<8xf32> to vector<8x1xf32>
    %203 = tpu.reciprocal %202 {approx = true} : vector<8x1xf32> -> vector<8x1xf32>
    %204 = vector.broadcast %203 : vector<8x1xf32> to vector<8x8xf32>
    %205 = arith.mulf %200, %204 : vector<8x8xf32>
    %cst_50 = arith.constant dense<0.000000e+00> : vector<8x32xf32>
    %206 = tpu.matmul %205, %190, %cst_50 {dimension_numbers = #tpu.dot_dimension_numbers<[1], [0], [0], [1], [0, 0, 1, 1], [], []>} : vector<8x8xf32>, vector<8x32xf32>, vector<8x32xf32> -> vector<8x32xf32>
    %c176 = arith.constant 176 : index
    %c0_51 = arith.constant 0 : index
    %207 = vector.load %arg1[%c176, %c0_51] : memref<192x128xf32, #tpu.memory_space<vmem>>, vector<2x8xf32>
    %cst_52 = arith.constant dense<0.000000e+00> : vector<2x32xf32>
    %208 = tpu.matmul %207, %206, %cst_52 {dimension_numbers = #tpu.dot_dimension_numbers<[1], [0], [0], [1], [0, 0, 1, 1], [], []>} : vector<2x8xf32>, vector<8x32xf32>, vector<2x32xf32> -> vector<2x32xf32>
    %cst_53 = arith.constant 5.000000e-01 : f32
    %209 = vector.broadcast %cst_53 : f32 to vector<2x32xf32>
    %210 = arith.mulf %209, %208 : vector<2x32xf32>
    %cst_54 = arith.constant 0.707106769 : f32
    %211 = vector.broadcast %cst_54 : f32 to vector<2x32xf32>
    %212 = arith.mulf %208, %211 : vector<2x32xf32>
    %213 = math.absf %212 : vector<2x32xf32>
    %cst_55 = arith.constant 0.327591091 : f32
    %214 = vector.broadcast %cst_55 : f32 to vector<2x32xf32>
    %215 = arith.mulf %214, %213 : vector<2x32xf32>
    %cst_56 = arith.constant 1.000000e+00 : f32
    %216 = vector.broadcast %cst_56 : f32 to vector<2x32xf32>
    %217 = arith.addf %216, %215 : vector<2x32xf32>
    %cst_57 = arith.constant 1.000000e+00 : f32
    %218 = vector.broadcast %cst_57 : f32 to vector<2x32xf32>
    %219 = arith.divf %218, %217 : vector<2x32xf32>
    %220 = arith.mulf %219, %219 : vector<2x32xf32>
    %cst_58 = arith.constant 0.254829586 : f32
    %221 = vector.broadcast %cst_58 : f32 to vector<2x32xf32>
    %222 = arith.mulf %221, %219 : vector<2x32xf32>
    %cst_59 = arith.constant -0.284496725 : f32
    %223 = vector.broadcast %cst_59 : f32 to vector<2x32xf32>
    %224 = arith.mulf %223, %220 : vector<2x32xf32>
    %225 = arith.addf %222, %224 : vector<2x32xf32>
    %226 = arith.mulf %219, %220 : vector<2x32xf32>
    %cst_60 = arith.constant -1.45315206 : f32
    %227 = vector.broadcast %cst_60 : f32 to vector<2x32xf32>
    %228 = arith.mulf %227, %219 : vector<2x32xf32>
    %cst_61 = arith.constant 1.42141378 : f32
    %229 = vector.broadcast %cst_61 : f32 to vector<2x32xf32>
    %230 = arith.addf %229, %228 : vector<2x32xf32>
    %cst_62 = arith.constant 1.06140542 : f32
    %231 = vector.broadcast %cst_62 : f32 to vector<2x32xf32>
    %232 = arith.mulf %231, %220 : vector<2x32xf32>
    %233 = arith.addf %230, %232 : vector<2x32xf32>
    %234 = arith.mulf %226, %233 : vector<2x32xf32>
    %235 = arith.addf %225, %234 : vector<2x32xf32>
    %cst_63 = arith.constant 0.000000e+00 : f32
    %236 = vector.broadcast %cst_63 : f32 to vector<2x32xf32>
    %237 = arith.subf %236, %213 : vector<2x32xf32>
    %238 = arith.mulf %237, %213 : vector<2x32xf32>
    %239 = math.exp %238 : vector<2x32xf32>
    %240 = arith.mulf %235, %239 : vector<2x32xf32>
    %cst_64 = arith.constant 1.000000e+00 : f32
    %241 = vector.broadcast %cst_64 : f32 to vector<2x32xf32>
    %242 = arith.subf %241, %240 : vector<2x32xf32>
    %cst_65 = arith.constant 0.000000e+00 : f32
    %243 = vector.broadcast %cst_65 : f32 to vector<2x32xf32>
    %244 = arith.cmpf oge, %212, %243 : vector<2x32xf32>
    %cst_66 = arith.constant 0.000000e+00 : f32
    %245 = vector.broadcast %cst_66 : f32 to vector<2x32xf32>
    %246 = arith.subf %245, %242 : vector<2x32xf32>
    %247 = arith.select %244, %242, %246 : vector<2x32xi1>, vector<2x32xf32>
    %cst_67 = arith.constant 1.000000e+00 : f32
    %248 = vector.broadcast %cst_67 : f32 to vector<2x32xf32>
    %249 = arith.addf %248, %247 : vector<2x32xf32>
    %250 = arith.mulf %210, %249 : vector<2x32xf32>
    %c112 = arith.constant 112 : index
    %c0_68 = arith.constant 0 : index
    %251 = vector.load %arg1[%c112, %c0_68] : memref<192x128xf32, #tpu.memory_space<vmem>>, vector<32x8xf32>
    %cst_69 = arith.constant dense<0.000000e+00> : vector<2x8xf32>
    %252 = tpu.matmul %250, %251, %cst_69 {dimension_numbers = #tpu.dot_dimension_numbers<[1], [0], [0], [1], [0, 0, 1, 1], [], []>} : vector<2x32xf32>, vector<32x8xf32>, vector<2x8xf32> -> vector<2x8xf32>
    %c184 = arith.constant 184 : index
    %c0_70 = arith.constant 0 : index
    %253 = vector.load %arg1[%c184, %c0_70] : memref<192x128xf32, #tpu.memory_space<vmem>>, vector<1x8xf32>
    %254 = vector.broadcast %253 : vector<1x8xf32> to vector<2x8xf32>
    %255 = arith.addf %252, %254 : vector<2x8xf32>
    %cst_71 = arith.constant dense<0xFF800000> : vector<8xf32>
    %256 = vector.multi_reduction <maximumf>, %255, %cst_71 [0] : vector<2x8xf32> to vector<8xf32>
    %257 = vector.shape_cast %256 : vector<8xf32> to vector<1x8xf32>
    %258 = vector.broadcast %257 : vector<1x8xf32> to vector<2x8xf32>
    %259 = arith.subf %255, %258 : vector<2x8xf32>
    %260 = math.exp %259 : vector<2x8xf32>
    %cst_72 = arith.constant dense<0.000000e+00> : vector<8xf32>
    %261 = vector.multi_reduction <add>, %260, %cst_72 [0] : vector<2x8xf32> to vector<8xf32>
    %262 = vector.shape_cast %261 : vector<8xf32> to vector<1x8xf32>
    %263 = vector.broadcast %262 : vector<1x8xf32> to vector<2x8xf32>
    %264 = arith.divf %260, %263 : vector<2x8xf32>
    %c0_73 = arith.constant 0 : index
    %c0_74 = arith.constant 0 : index
    %265 = vector.load %arg2[%c0_73, %c0_74] : memref<2x8xf32, #tpu.memory_space<vmem>>, vector<2x8xf32>
    tpu.vector_store %arg2[%c0_73, %c0_74], %264 {strides = array<i32>} : memref<2x8xf32, #tpu.memory_space<vmem>>, vector<2x8xf32>,
    return
  }
}

</mosaic_0001>

<bundles_post_ra>
// kernel: classifier_forward.1
= control target key start
LH: loop header
LB: loop body
LE: loop exit
PB: predicated region body
PF: predicated region fallthrough
CT: control target
= control target key end

     0   :  { %7 = vsyncpa [#allocation3], 0  ;;  %s1861_s0 = inlined_call_operand.hbm [shape: f32[16,16], index: 0, kind: input, shape index: {}]   ;;  %s1862_s1 = inlined_call_operand.hbm [shape: f32[192,128], index: 1, kind: input, shape index: {}]   ;;  %s1863_s2 = inlined_call_operand.hbm [shape: f32[2,8], index: 2, kind: output, shape index: {}]  }
   0x1   :  { %8 = vsyncpa [#allocation6], 0 }
   0x2   :  { %9 = vsyncpa [#allocation4], 0  ;;  %s1677_s9 = smov [#allocation2]  }
   0x3   :  { %s15_s10 = sshll.u32 %s1677_s9, 4  ;;  %s16_s10 = int_to_ptr.vmem [resolvable:$true] %s15_s10 }
   0x4   :  { %s1619_s11 = scalar_lea.vmem %s16_s10, 256  ;;  %p1624_p1 = scmp.lt.s32.totalorder %s16_s10, %s16_s10 }
   0x5   :  { %p1620_p0 = scmp.ne.s32.totalorder %s16_s10, %s1619_s11  ;;  %p1625_p2 = scmp.lt.s32.totalorder %s1619_s11, %s1619_s11 }
   0x7   :  { %p1626_p3 = por %p1625_p2, %p1624_p1 }
   0x9   :  { %p1627_p4 = pnand %p1626_p3, %p1620_p0 }
   0xb   :  { %1630 = shalt.err (!%p1627_p4)
}
   0xc   :  { %s1678_s12 = smov 128   ;;  %s1679_s13 = smov 8  }
   0xd   :  { %21 = dma.hbm_to_vmem [thread:$0]  %s1861_s0, 256, %s16_s10, [#allocation3], %s1678_s12, %s1678_s12, %s1679_s13  }
   0xe   :  { %s1680_s16 = smov [#allocation5]  }
   0xf   :  { %s27_s17 = sshll.u32 %s1680_s16, 4  ;;  %s28_s17 = int_to_ptr.vmem [resolvable:$true] %s27_s17 }
  0x10   :  { %s1639_s18 = scalar_lea.vmem %s28_s17, 3072  ;;  %p1644_p6 = scmp.lt.s32.totalorder %s28_s17, %s28_s17 }
  0x11   :  { %p1640_p5 = scmp.ne.s32.totalorder %s28_s17, %s1639_s18  ;;  %p1645_p7 = scmp.lt.s32.totalorder %s1639_s18, %s1639_s18 }
  0x13   :  { %p1646_p8 = por %p1645_p7, %p1644_p6 }
  0x15   :  { %p1647_p9 = pnand %p1646_p8, %p1640_p5 }
  0x17   :  { %1650 = shalt.err (!%p1647_p9)
}
  0x18   :  { %33 = dma.hbm_to_vmem [thread:$0]  %s1862_s1, 3072, %s28_s17, [#allocation6], %s1678_s12, %s1678_s12, %s1679_s13  }
  0x19   :  { %1671 = dma.done.wait [#allocation3], 256  }
  0x1a   :  { %1672 = vsyncadd [#allocation3], 4294967040 }
  0x1b   :  { %1673 = dma.done.wait [#allocation6], 3072  }
  0x1c   :  { %1674 = vsyncadd [#allocation6], 4294964224  ;;  %vm43_vm0 = vcmask 130048   ;;  %v42_v0 = vld [vmem:[#allocation2 + $0x8] sm:$0xff]  ;;  %v41_v1 = vld [vmem:[#allocation2] sm:$0xff]  ;;  %v1681_v15 = vmov 0.0  }
  0x1d   :  { %v47_v2 = vsel %vm43_vm0, %v42_v0, 0.0  ;;  %v44_v3 = vsel %vm43_vm0, %v41_v1, 0.0  ;;  %v85_v14 = vld [vmem:[#allocation5 + $0x38] sm:$0xff]  ;;  %1440 = vmatprep.subr.bf16.mxu1 %v1681_v15  ;;  %v1363_v23 = vld [vmem:[#allocation5 + $0x90] ss:$0 sm:$0xff]  ;;  %v86_v34 = vld [vmem:[#allocation5 + $0x40] sm:$0xff] }
  0x1e   :  { %48 = vadd.xlane.f32.xlu0 %v47_v2  ;;  %1437 = vmatprep.mubr.msk.f32.mxu0 %vm43_vm0, %v85_v14  ;;  %v1364_v25 = vld [vmem:[#allocation5 + $0x98] ss:$0 sm:$0xff]  ;;  %v223_v31 = vld [vmem:[#allocation5 + $0x10] sm:$0xff]  ;;  %v221_v36 = vld [vmem:[#allocation5] sm:$0xff]  ;;  %vm1682_vm1 = vmmov 0   ;;  %v1683_v42 = vmov 0  }
  0x1f   :  { %v224_v32 = vld [vmem:[#allocation5 + $0x18] sm:$0xff]  ;;  %v222_v37 = vld [vmem:[#allocation5 + $0x8] sm:$0xff]  ;;  %v169_v39 = vld [vmem:[#allocation5 + $0x20] sm:$0xff]  ;;  %1442 = vmatprep.mubr.msk.bf16.mxu1 %vm1682_vm1, %v1681_v15  ;;  %s1684_s0 = smov 64   ;;  %s1685_s1 = smov 32   ;;  %vm227_vm2 = vcmask 261120  }
  0x20   :  { %v1715_v35 = vpack.c.bf16 %v224_v32, %v223_v31  ;;  %v1720_v38 = vpack.c.bf16 %v222_v37, %v221_v36  ;;  %v170_v40 = vld [vmem:[#allocation5 + $0x28] sm:$0xff]  ;;  %v1367_v50 = vld [vmem:[#allocation5 + $0x30] ss:$0 sm:$0xff]  ;;  %vm821_vm3 = vcmask 1041408   ;;  %vm817_vm4 = vcmask 15360   ;;  %s1686_s21 = smov 96  }
  0x21   :  { %v171_v41 = vpack.c.bf16 %v170_v40, %v169_v39  ;;  %vm1053_vm5 = vcmask 64512   ;;  %vm1326_vm7 = vcmask 58368   ;;  %s1687_s22 = smov [#allocation7]  }
  0x22   :  { %45 = vadd.xlane.f32.xlu0 %v44_v3  ;;  %s1353_s23 = sshll.u32 %s1687_s22, 4  ;;  %s1354_s23 = int_to_ptr.vmem [resolvable:$true] %s1353_s23 }
  0x23   :  { %1441 = vmatpush3.bf16.msra.mxu1 %v171_v41  ;;  %s1651_s24 = scalar_lea.vmem %s1354_s23, 32  ;;  %p1656_p11 = scmp.lt.s32.totalorder %s1354_s23, %s1354_s23 }
  0x24   :  { %1454 = vmatprep.subr.bf16.mxu1 %v1681_v15  ;;  %p1652_p10 = scmp.ne.s32.totalorder %s1354_s23, %s1651_s24  ;;  %p1657_p12 = scmp.lt.s32.totalorder %s1651_s24, %s1651_s24 }
  0x26   :  { %p1658_p13 = por %p1657_p12, %p1656_p11 }
  0x28   :  { %p1659_p0 = pnand %p1658_p13, %p1652_p10 }
  0xa7   :  { %v49_v4 = vpop.xlane.xlu0 %48 }
  0xa8   :  { %v52_v5 = vmul.f32 0.0625, %v49_v4 }
  0xaa   :  { %v54_v6 = vsub.f32 %v42_v0, %v52_v5 }
  0xab   :  { %v46_v7 = vpop.xlane.xlu0 %45 }
  0xac   :  { %v51_v8 = vmul.f32 0.0625, %v46_v7  ;;  %v56_v9 = vmul.f32 %v54_v6, %v54_v6 }
  0xae   :  { %v53_v10 = vsub.f32 %v41_v1, %v51_v8  ;;  %v60_v11 = vsel %vm43_vm0, %v56_v9, 0.0 }
  0xaf   :  { %61 = vadd.xlane.f32.xlu1 %v60_v11 }
  0xb0   :  { %v55_v12 = vmul.f32 %v53_v10, %v53_v10 }
  0xb2   :  { %v57_v13 = vsel %vm43_vm0, %v55_v12, 0.0 }
  0xb3   :  { %58 = vadd.xlane.f32.xlu1 %v57_v13 }
 0x138   :  { %v62_v16 = vpop.xlane.xlu1 %61 }
 0x139   :  { %v64_v17 = vmul.f32 0.0625, %v62_v16 }
 0x13b   :  { %v66_v18 = vadd.f32 1e-05, %v64_v17 }
 0x13c   :  { %v59_v19 = vpop.xlane.xlu1 %58 }
 0x13d   :  { %1563 = vrsqrt.f32 %v66_v18  ;;  %v63_v20 = vmul.f32 0.0625, %v59_v19 }
 0x13f   :  { %v65_v21 = vadd.f32 1e-05, %v63_v20 }
 0x141   :  { %1565 = vrsqrt.f32 %v65_v21 }
 0x14a   :  { %v1564_v22 = vpop.eup %1563 }
 0x14b   :  { %v70_v24 = vmul.f32 %v1564_v22, %v54_v6 }
 0x14d   :  { %v77_v26 = vmul.f32 %v1363_v23, %v70_v24 }
 0x14e   :  { %v1566_v27 = vpop.eup %1565 }
 0x14f   :  { %v69_v28 = vmul.f32 %v1566_v27, %v53_v10  ;;  %v84_v29 = vadd.f32 %v1364_v25, %v77_v26 }
 0x151   :  { %v76_v30 = vmul.f32 %v1363_v23, %v69_v28  ;;  %1433 = vmatprep.subr.mxu0 %v84_v29 }
 0x152   :  { %1434 = vmatpush3.msra.mxu0 %v84_v29 }
 0x153   :  { %v83_v33 = vadd.f32 %v1364_v25, %v76_v30 }
 0x155   :  { %1435 = vmatprep.subr.mxu0 %v83_v33 }
 0x156   :  { %1436 = vmatpush3.msra.mxu0 %v83_v33 }
 0x157   :  { %1438 = vmatmul.mubr.msk.f32.vlgmr.msra.gmra.mxu0 %vm43_vm0, %v86_v34  ;;  %1446 = vmatprep.subr.bf16.mxu0 %v1681_v15 }
 0x158   :  { %1447 = vmatpush3.bf16.msra.mxu0 %v1715_v35  ;;  %1450 = vmatprep.mubr.msk.bf16.mxu0 %vm1682_vm1, %v1681_v15 }
 0x159   :  { %1448 = vmatprep.subr.bf16.mxu0 %v1681_v15 }
 0x15c   :  { %1449 = vmatpush3.bf16.msra.mxu0 %v1720_v38 }
 0x15d   :  { %1462 = vmatprep.subr.bf16.mxu0 %v1681_v15 }
 0x15f   :  { %1451 = vmatmul.mubr.bf16.vlgmr.msra.gmra.mxu0 %v1683_v42 }
 0x160   :  { %1463 = vmatpush3.bf16.msra.mxu0 %v1715_v35  ;;  %1466 = vmatprep.mubr.msk.bf16.mxu0 %vm1682_vm1, %v1681_v15 }
 0x161   :  { %1464 = vmatprep.subr.bf16.mxu0 %v1681_v15 }
 0x164   :  { %1465 = vmatpush3.bf16.msra.mxu0 %v1720_v38 }
 0x165   :  { %1478 = vmatprep.subr.bf16.mxu0 %v1681_v15 }
 0x217   :  { %v1439_v43 = vpop.f32.mrf.mxu0 }
 0x219   :  { %v159_v44 = vpop.f32.mrf.mxu0 }
 0x21a   :  { %v168_v45 = vpack.c.bf16 %v1439_v43, %v159_v44 }
 0x21c   :  { %1443 = vmatmul.mubr.msk.bf16.vlgmr.msra.gmra.mxu1 %vm43_vm0, %v168_v45 }
 0x21d   :  { %1455 = vmatpush3.bf16.msra.mxu1 %v1715_v35  ;;  %1458 = vmatprep.mubr.msk.bf16.mxu1 %vm1682_vm1, %v1681_v15 }
 0x21e   :  { %1456 = vmatprep.subr.bf16.mxu1 %v1681_v15 }
 0x21f   :  { %v265_v46 = vpop.f32.mrf.mxu0 }
 0x221   :  { %1457 = vmatpush3.bf16.msra.mxu1 %v1720_v38  ;;  %v1452_v47 = vpop.f32.mrf.mxu0 }
 0x222   :  { %1470 = vmatprep.subr.bf16.mxu1 %v1681_v15 }
 0x223   :  { %v268_v48 = vpop.f32.mrf.mxu0 }
 0x225   :  { %v1453_v49 = vpop.f32.mrf.mxu0 }
 0x2dc   :  { %v214_v51 = vpop.f32.mrf.mxu1 }
 0x2dd   :  { %v1743_v52 = vadd.f32 %v1367_v50, %v214_v51 }
 0x2de   :  { %v1444_v53 = vpop.f32.mrf.mxu1 }
 0x2df   :  { %v271_v54 = vadd.f32 %v265_v46, %v1743_v52 }
 0x2e0   :  { %v217_v55 = vpop.f32.mrf.mxu1 }
 0x2e1   :  { %1567 = vtanh.f32 %v271_v54  ;;  %v1746_v56 = vadd.f32 %v1367_v50, %v217_v55 }
 0x2e2   :  { %v1445_v57 = vpop.f32.mrf.mxu1 }
 0x2ee   :  { %v1568_v58 = vpop.eup %1567 }
 0x2ef   :  { %277 = vrot.lane.b32.xlu0 %v1568_v58, %s1684_s0  ;;  %v273_v59 = vmul.f32 0.5, %v1568_v58 }
 0x2f1   :  { %v274_v60 = vadd.f32 0.5, %v273_v59 }
 0x2f3   :  { %v275_v63 = vmul.f32 0.0, %v274_v60 }
 0x361   :  { %v278_v61 = vpop.permute.xlu0 %277 }
 0x362   :  { %v280_v62 = vmul.f32 %v278_v61, %v274_v60 }
 0x364   :  { %282 = vrot.lane.b32.xlu1 %v280_v62, %s1685_s1 }
 0x3d6   :  { %v283_v0 = vpop.permute.xlu1 %282 }
 0x3d7   :  { %v285_v1 = vadd.f32 %v283_v0, %v275_v63 }
 0x3d9   :  { %1569 = vtanh.f32 %v285_v1  ;;  %v347_v19 = vrot.slane %v285_v1, 6 }
 0x3e6   :  { %v1570_v2 = vpop.eup %1569 }
 0x3e7   :  { %288 = vrot.lane.b32.xlu1 %v1570_v2, %s1684_s0 }
 0x459   :  { %v289_v3 = vpop.permute.xlu1 %288 }
 0x45a   :  { %v291_v4 = vmul.f32 %v289_v3, %v274_v60 }
 0x45c   :  { %v292_v5 = vpack.c.bf16 %v291_v4, %v291_v4 }
 0x45e   :  { %294 = vrot.lane.b32.xlu1 %v292_v5, %s1685_s1 }
 0x4d0   :  { %v295_v6 = vpop.permute.xlu1 %294 }
 0x4d1   :  { %1459 = vmatmul.mubr.msk.bf16.vlgmr.msra.gmra.mxu1 %vm227_vm2, %v295_v6 }
 0x4d2   :  { %1471 = vmatpush3.bf16.msra.mxu1 %v1715_v35  ;;  %1474 = vmatprep.mubr.msk.bf16.mxu1 %vm1682_vm1, %v1681_v15 }
 0x4d3   :  { %1472 = vmatprep.subr.bf16.mxu1 %v1681_v15 }
 0x4d6   :  { %1473 = vmatpush3.bf16.msra.mxu1 %v1720_v38 }
 0x4d7   :  { %1486 = vmatprep.subr.bf16.mxu1 %v1681_v15 }
 0x591   :  { %v333_v7 = vpop.f32.mrf.mxu1 }
 0x592   :  { %v340_v8 = vrot.slane %v333_v7, 6 }
 0x593   :  { %v1460_v9 = vpop.f32.mrf.mxu1 }
 0x594   :  { %v342_v10 = vadd.f32 %v340_v8, %v1743_v52 }
 0x595   :  { %v336_v11 = vpop.f32.mrf.mxu1 }
 0x596   :  { %1571 = vtanh.f32 %v342_v10 }
 0x597   :  { %v1461_v12 = vpop.f32.mrf.mxu1 }
 0x5a3   :  { %v1572_v13 = vpop.eup %1571 }
 0x5a4   :  { %351 = vrot.lane.b32.xlu0 %v1572_v13, %s1684_s0  ;;  %v344_v14 = vmul.f32 0.5, %v1572_v13 }
 0x5a6   :  { %v345_v16 = vadd.f32 0.5, %v344_v14 }
 0x5a8   :  { %v349_v20 = vmul.f32 %v347_v19, %v345_v16 }
 0x616   :  { %v352_v17 = vpop.permute.xlu0 %351 }
 0x617   :  { %v354_v18 = vmul.f32 %v352_v17, %v345_v16 }
 0x619   :  { %356 = vrot.lane.b32.xlu1 %v354_v18, %s1685_s1 }
 0x68b   :  { %v357_v21 = vpop.permute.xlu1 %356 }
 0x68c   :  { %v359_v22 = vadd.f32 %v357_v21, %v349_v20 }
 0x68e   :  { %1573 = vtanh.f32 %v359_v22  ;;  %v422_v42 = vrot.slane %v359_v22, 6 }
 0x69b   :  { %v1574_v23 = vpop.eup %1573 }
 0x69c   :  { %362 = vrot.lane.b32.xlu0 %v1574_v23, %s1684_s0 }
 0x70e   :  { %v363_v24 = vpop.permute.xlu0 %362 }
 0x70f   :  { %v365_v25 = vmul.f32 %v363_v24, %v345_v16 }
 0x711   :  { %v366_v26 = vpack.c.bf16 %v365_v25, %v365_v25 }
 0x713   :  { %v368_v27 = vrot.slane %v366_v26, 1 }
 0x715   :  { %369 = vrot.lane.b32.xlu1 %v368_v27, %s1685_s1 }
 0x787   :  { %v370_v28 = vpop.permute.xlu1 %369 }
 0x788   :  { %1467 = vmatmul.mubr.msk.bf16.vlgmr.msra.gmra.mxu0 %vm227_vm2, %v370_v28 }
 0x789   :  { %1479 = vmatpush3.bf16.msra.mxu0 %v1715_v35  ;;  %1482 = vmatprep.mubr.msk.bf16.mxu0 %vm1682_vm1, %v1681_v15 }
 0x78a   :  { %1480 = vmatprep.subr.bf16.mxu0 %v1681_v15 }
 0x78d   :  { %1481 = vmatpush3.bf16.msra.mxu0 %v1720_v38 }
 0x78e   :  { %1494 = vmatprep.subr.bf16.mxu0 %v1681_v15 }
 0x848   :  { %v408_v29 = vpop.f32.mrf.mxu0 }
 0x849   :  { %v415_v30 = vrot.slane %v408_v29, 4 }
 0x84a   :  { %v1468_v31 = vpop.f32.mrf.mxu0 }
 0x84b   :  { %v417_v32 = vadd.f32 %v415_v30, %v1743_v52 }
 0x84c   :  { %v411_v33 = vpop.f32.mrf.mxu0 }
 0x84d   :  { %1575 = vtanh.f32 %v417_v32 }
 0x84e   :  { %v1469_v34 = vpop.f32.mrf.mxu0 }
 0x85a   :  { %v1576_v36 = vpop.eup %1575 }
 0x85b   :  { %426 = vrot.lane.b32.xlu0 %v1576_v36, %s1684_s0  ;;  %v419_v37 = vmul.f32 0.5, %v1576_v36 }
 0x85d   :  { %v420_v39 = vadd.f32 0.5, %v419_v37 }
 0x85f   :  { %v424_v43 = vmul.f32 %v422_v42, %v420_v39 }
 0x8cd   :  { %v427_v40 = vpop.permute.xlu0 %426 }
 0x8ce   :  { %v429_v41 = vmul.f32 %v427_v40, %v420_v39 }
 0x8d0   :  { %431 = vrot.lane.b32.xlu1 %v429_v41, %s1685_s1 }
 0x942   :  { %v432_v44 = vpop.permute.xlu1 %431 }
 0x943   :  { %v434_v45 = vadd.f32 %v432_v44, %v424_v43 }
 0x945   :  { %1577 = vtanh.f32 %v434_v45  ;;  %v497_v1 = vrot.slane %v434_v45, 6 }
 0x952   :  { %v1578_v46 = vpop.eup %1577 }
 0x953   :  { %437 = vrot.lane.b32.xlu0 %v1578_v46, %s1684_s0 }
 0x9c5   :  { %v438_v47 = vpop.permute.xlu0 %437 }
 0x9c6   :  { %v440_v48 = vmul.f32 %v438_v47, %v420_v39 }
 0x9c8   :  { %v441_v49 = vpack.c.bf16 %v440_v48, %v440_v48 }
 0x9ca   :  { %v443_v50 = vrot.slane %v441_v49, 2 }
 0x9cc   :  { %444 = vrot.lane.b32.xlu1 %v443_v50, %s1685_s1 }
 0xa3e   :  { %v445_v51 = vpop.permute.xlu1 %444 }
 0xa3f   :  { %1475 = vmatmul.mubr.msk.bf16.vlgmr.msra.gmra.mxu1 %vm227_vm2, %v445_v51 }
 0xa40   :  { %1487 = vmatpush3.bf16.msra.mxu1 %v1715_v35  ;;  %1490 = vmatprep.mubr.msk.bf16.mxu1 %vm1682_vm1, %v1681_v15 }
 0xa41   :  { %1488 = vmatprep.subr.bf16.mxu1 %v1681_v15 }
 0xa44   :  { %1489 = vmatpush3.bf16.msra.mxu1 %v1720_v38 }
 0xa45   :  { %1502 = vmatprep.subr.bf16.mxu1 %v1681_v15 }
 0xaff   :  { %v483_v53 = vpop.f32.mrf.mxu1 }
 0xb00   :  { %v490_v54 = vrot.slane %v483_v53, 2 }
 0xb01   :  { %v1476_v55 = vpop.f32.mrf.mxu1 }
 0xb02   :  { %v492_v57 = vadd.f32 %v490_v54, %v1743_v52 }
 0xb03   :  { %v486_v58 = vpop.f32.mrf.mxu1 }
 0xb04   :  { %1579 = vtanh.f32 %v492_v57 }
 0xb05   :  { %v1477_v59 = vpop.f32.mrf.mxu1 }
 0xb11   :  { %v1580_v60 = vpop.eup %1579 }
 0xb12   :  { %501 = vrot.lane.b32.xlu0 %v1580_v60, %s1684_s0  ;;  %v494_v61 = vmul.f32 0.5, %v1580_v60 }
 0xb14   :  { %v495_v62 = vadd.f32 0.5, %v494_v61 }
 0xb16   :  { %v499_v2 = vmul.f32 %v497_v1, %v495_v62 }
 0xb84   :  { %v502_v63 = vpop.permute.xlu0 %501 }
 0xb85   :  { %v504_v0 = vmul.f32 %v502_v63, %v495_v62 }
 0xb87   :  { %506 = vrot.lane.b32.xlu1 %v504_v0, %s1685_s1 }
 0xbf9   :  { %v507_v3 = vpop.permute.xlu1 %506 }
 0xbfa   :  { %v509_v4 = vadd.f32 %v507_v3, %v499_v2 }
 0xbfc   :  { %1581 = vtanh.f32 %v509_v4  ;;  %v569_v21 = vrot.slane %v509_v4, 6 }
 0xc09   :  { %v1582_v5 = vpop.eup %1581 }
 0xc0a   :  { %512 = vrot.lane.b32.xlu0 %v1582_v5, %s1684_s0 }
 0xc7c   :  { %v513_v52 = vpop.permute.xlu0 %512 }
 0xc7d   :  { %v515_v6 = vmul.f32 %v513_v52, %v495_v62 }
 0xc7f   :  { %v516_v7 = vpack.c.bf16 %v515_v6, %v515_v6 }
 0xc81   :  { %v518_v8 = vrot.slane %v516_v7, 3 }
 0xc83   :  { %519 = vrot.lane.b32.xlu1 %v518_v8, %s1685_s1 }
 0xcf5   :  { %v520_v9 = vpop.permute.xlu1 %519 }
 0xcf6   :  { %1483 = vmatmul.mubr.msk.bf16.vlgmr.msra.gmra.mxu0 %vm227_vm2, %v520_v9 }
 0xcf7   :  { %1495 = vmatpush3.bf16.msra.mxu0 %v1715_v35  ;;  %1498 = vmatprep.mubr.msk.bf16.mxu0 %vm1682_vm1, %v1681_v15 }
 0xcf8   :  { %1496 = vmatprep.subr.bf16.mxu0 %v1681_v15 }
 0xcfb   :  { %1497 = vmatpush3.bf16.msra.mxu0 %v1720_v38 }
 0xcfc   :  { %1510 = vmatprep.subr.mxu0 %v1681_v15 }
 0xdb6   :  { %v558_v10 = vpop.f32.mrf.mxu0 }
 0xdb7   :  { %v564_v11 = vadd.f32 %v558_v10, %v1746_v56 }
 0xdb8   :  { %v1484_v12 = vpop.f32.mrf.mxu0 }
 0xdb9   :  { %1583 = vtanh.f32 %v564_v11 }
 0xdba   :  { %v561_v13 = vpop.f32.mrf.mxu0 }
 0xdbc   :  { %v1485_v14 = vpop.f32.mrf.mxu0 }
 0xdc6   :  { %v1584_v16 = vpop.eup %1583 }
 0xdc7   :  { %573 = vrot.lane.b32.xlu0 %v1584_v16, %s1684_s0  ;;  %v566_v17 = vmul.f32 0.5, %v1584_v16 }
 0xdc9   :  { %v567_v18 = vadd.f32 0.5, %v566_v17 }
 0xdcb   :  { %v571_v22 = vmul.f32 %v569_v21, %v567_v18 }
 0xe39   :  { %v574_v19 = vpop.permute.xlu0 %573 }
 0xe3a   :  { %v576_v20 = vmul.f32 %v574_v19, %v567_v18 }
 0xe3c   :  { %578 = vrot.lane.b32.xlu1 %v576_v20, %s1685_s1 }
 0xeae   :  { %v579_v23 = vpop.permute.xlu1 %578 }
 0xeaf   :  { %v581_v24 = vadd.f32 %v579_v23, %v571_v22 }
 0xeb1   :  { %1585 = vtanh.f32 %v581_v24 }
 0xebe   :  { %v1586_v25 = vpop.eup %1585 }
 0xebf   :  { %584 = vrot.lane.b32.xlu0 %v1586_v25, %s1684_s0 }
 0xf31   :  { %v585_v26 = vpop.permute.xlu0 %584 }
 0xf32   :  { %v587_v27 = vmul.f32 %v585_v26, %v567_v18  ;;  %v896_v26 = vld [vmem:[#allocation5 + $0x58] sm:$0xff] }
 0xf34   :  { %v588_v28 = vpack.c.bf16 %v587_v27, %v587_v27  ;;  %v895_v27 = vld [vmem:[#allocation5 + $0x50] sm:$0xff] }
 0xf36   :  { %590 = vrot.lane.b32.xlu1 %v588_v28, %s1685_s1 }
 0xfa8   :  { %v591_v29 = vpop.permute.xlu1 %590 }
 0xfa9   :  { %1491 = vmatmul.mubr.msk.bf16.vlgmr.msra.gmra.mxu1 %vm227_vm2, %v591_v29 }
 0xfaa   :  { %1503 = vmatpush3.bf16.msra.mxu1 %v1715_v35  ;;  %1506 = vmatprep.mubr.msk.bf16.mxu1 %vm1682_vm1, %v1681_v15 }
 0xfab   :  { %1504 = vmatprep.subr.bf16.mxu1 %v1681_v15 }
 0xfae   :  { %1505 = vmatpush3.bf16.msra.mxu1 %v1720_v38  ;;  %v643_v38 = vrot.slane %v581_v24, 6 }
 0xfaf   :  { %1515 = vmatprep.subr.mxu1 %v1681_v15 }
0x1069   :  { %v629_v30 = vpop.f32.mrf.mxu1 }
0x106a   :  { %v636_v31 = vrot.slane %v629_v30, 6 }
0x106b   :  { %v1492_v32 = vpop.f32.mrf.mxu1 }
0x106c   :  { %v638_v33 = vadd.f32 %v636_v31, %v1746_v56  ;;  %v812_v31 = vld [vmem:[#allocation5 + $0xa0] sm:$0xff] }
0x106d   :  { %v632_v34 = vpop.f32.mrf.mxu1 }
0x106e   :  { %1587 = vtanh.f32 %v638_v33  ;;  %v894_v33 = vld [vmem:[#allocation5 + $0x48] sm:$0xff] }
0x106f   :  { %v1493_v36 = vpop.f32.mrf.mxu1 }
0x107b   :  { %v1588_v37 = vpop.eup %1587 }
0x107c   :  { %647 = vrot.lane.b32.xlu0 %v1588_v37, %s1684_s0  ;;  %v640_v35 = vmul.f32 0.5, %v1588_v37  ;;  %v971_v37 = vld [vmem:[#allocation5 + $0x68] sm:$0xff] }
0x107e   :  { %v641_v39 = vadd.f32 0.5, %v640_v35 }
0x1080   :  { %v645_v42 = vmul.f32 %v643_v38, %v641_v39 }
0x10ee   :  { %v648_v40 = vpop.permute.xlu0 %647 }
0x10ef   :  { %v650_v41 = vmul.f32 %v648_v40, %v641_v39 }
0x10f1   :  { %652 = vrot.lane.b32.xlu1 %v650_v41, %s1685_s1 }
0x1163   :  { %v653_v43 = vpop.permute.xlu1 %652 }
0x1164   :  { %v655_v44 = vadd.f32 %v653_v43, %v645_v42  ;;  %v1051_v42 = vld [vmem:[#allocation5 + $0xa8] sm:$0xff] }
0x1166   :  { %1589 = vtanh.f32 %v655_v44  ;;  %v718_v0 = vrot.slane %v655_v44, 6 }
0x1173   :  { %v1590_v45 = vpop.eup %1589 }
0x1174   :  { %658 = vrot.lane.b32.xlu0 %v1590_v45, %s1684_s0 }
0x11e6   :  { %v659_v46 = vpop.permute.xlu0 %658 }
0x11e7   :  { %v661_v47 = vmul.f32 %v659_v46, %v641_v39 }
0x11e9   :  { %v662_v48 = vpack.c.bf16 %v661_v47, %v661_v47 }
0x11eb   :  { %v664_v49 = vrot.slane %v662_v48, 1 }
0x11ed   :  { %665 = vrot.lane.b32.xlu1 %v664_v49, %s1685_s1 }
0x125f   :  { %v666_v50 = vpop.permute.xlu1 %665 }
0x1260   :  { %1499 = vmatmul.mubr.msk.bf16.vlgmr.msra.gmra.mxu0 %vm227_vm2, %v666_v50 }
0x1261   :  { %1512 = vmatprep.mubr.msk.f32.mxu0 %vm1682_vm1, %v1681_v15 }
0x1320   :  { %v704_v51 = vpop.f32.mrf.mxu0 }
0x1321   :  { %v711_v53 = vrot.slane %v704_v51, 4 }
0x1322   :  { %v1500_v54 = vpop.f32.mrf.mxu0 }
0x1323   :  { %v713_v55 = vadd.f32 %v711_v53, %v1746_v56 }
0x1324   :  { %v707_v57 = vpop.f32.mrf.mxu0 }
0x1325   :  { %1591 = vtanh.f32 %v713_v55 }
0x1326   :  { %v1501_v58 = vpop.f32.mrf.mxu0 }
0x1327   :  { %v1141_v58 = vld [vmem:[#allocation5 + $0xb0] sm:$0x3] }
0x1332   :  { %v1592_v59 = vpop.eup %1591 }
0x1333   :  { %722 = vrot.lane.b32.xlu0 %v1592_v59, %s1684_s0  ;;  %v715_v60 = vmul.f32 0.5, %v1592_v59 }
0x1335   :  { %v716_v61 = vadd.f32 0.5, %v715_v60 }
0x1337   :  { %v720_v1 = vmul.f32 %v718_v0, %v716_v61  ;;  %v1244_v0 = vld [vmem:[#allocation5 + $0x70] sm:$0xff] }
0x13a5   :  { %v723_v62 = vpop.permute.xlu0 %722 }
0x13a6   :  { %v725_v63 = vmul.f32 %v723_v62, %v716_v61  ;;  %v1246_v62 = vld [vmem:[#allocation5 + $0x80] sm:$0xff] }
0x13a8   :  { %727 = vrot.lane.b32.xlu1 %v725_v63, %s1685_s1  ;;  %v1245_v63 = vld [vmem:[#allocation5 + $0x78] sm:$0xff] }
0x141a   :  { %v728_v2 = vpop.permute.xlu1 %727 }
0x141b   :  { %v730_v3 = vadd.f32 %v728_v2, %v720_v1 }
0x141d   :  { %1593 = vtanh.f32 %v730_v3  ;;  %v793_v21 = vrot.slane %v730_v3, 6 }
0x142a   :  { %v1594_v4 = vpop.eup %1593 }
0x142b   :  { %733 = vrot.lane.b32.xlu0 %v1594_v4, %s1684_s0 }
0x149d   :  { %v734_v5 = vpop.permute.xlu0 %733 }
0x149e   :  { %v736_v52 = vmul.f32 %v734_v5, %v716_v61  ;;  %v1247_v61 = vld [vmem:[#allocation5 + $0x88] sm:$0xff] }
0x14a0   :  { %v737_v6 = vpack.c.bf16 %v736_v52, %v736_v52 }
0x14a2   :  { %v739_v7 = vrot.slane %v737_v6, 2 }
0x14a4   :  { %740 = vrot.lane.b32.xlu1 %v739_v7, %s1685_s1 }
0x1516   :  { %v741_v8 = vpop.permute.xlu1 %740 }
0x1517   :  { %1507 = vmatmul.mubr.msk.bf16.vlgmr.msra.gmra.mxu1 %vm227_vm2, %v741_v8 }
0x1518   :  { %1523 = vmatprep.mubr.msk.f32.mxu1 %vm1682_vm1, %v1681_v15 }
0x15d7   :  { %v779_v9 = vpop.f32.mrf.mxu1 }
0x15d8   :  { %v786_v10 = vrot.slane %v779_v9, 2 }
0x15d9   :  { %v1508_v11 = vpop.f32.mrf.mxu1 }
0x15da   :  { %v788_v12 = vadd.f32 %v786_v10, %v1746_v56  ;;  %v897_v56 = vld [vmem:[#allocation5 + $0x60] sm:$0xff] }
0x15db   :  { %v782_v13 = vpop.f32.mrf.mxu1  ;;  %1516 = vmatpush3.msra.mxu1 %v897_v56 }
0x15dc   :  { %1595 = vtanh.f32 %v788_v12  ;;  %1517 = vmatprep.subr.mxu1 %v1681_v15 }
0x15dd   :  { %v1509_v14 = vpop.f32.mrf.mxu1  ;;  %1518 = vmatpush3.msra.mxu1 %v896_v26 }
0x15de   :  { %1519 = vmatprep.subr.mxu1 %v1681_v15 }
0x15df   :  { %1520 = vmatpush3.msra.mxu1 %v895_v27 }
0x15e0   :  { %1521 = vmatprep.subr.mxu1 %v1681_v15 }
0x15e1   :  { %1522 = vmatpush3.msra.mxu1 %v894_v33 }
0x15e2   :  { %1531 = vmatprep.subr.mxu1 %v1681_v15 }
0x15e9   :  { %v1596_v16 = vpop.eup %1595 }
0x15ea   :  { %797 = vrot.lane.b32.xlu0 %v1596_v16, %s1684_s0  ;;  %v790_v17 = vmul.f32 0.5, %v1596_v16 }
0x15ec   :  { %v791_v18 = vadd.f32 0.5, %v790_v17 }
0x15ee   :  { %v795_v22 = vmul.f32 %v793_v21, %v791_v18 }
0x165c   :  { %v798_v19 = vpop.permute.xlu0 %797 }
0x165d   :  { %v800_v20 = vmul.f32 %v798_v19, %v791_v18 }
0x165f   :  { %802 = vrot.lane.b32.xlu1 %v800_v20, %s1685_s1 }
0x16d1   :  { %v803_v23 = vpop.permute.xlu1 %802 }
0x16d2   :  { %v805_v24 = vadd.f32 %v803_v23, %v795_v22 }
0x16d4   :  { %1597 = vtanh.f32 %v805_v24 }
0x16e1   :  { %v1598_v25 = vpop.eup %1597 }
0x16e2   :  { %808 = vrot.lane.b32.xlu0 %v1598_v25, %s1684_s0 }
0x1754   :  { %v809_v28 = vpop.permute.xlu0 %808 }
0x1755   :  { %v811_v29 = vmul.f32 %v809_v28, %v791_v18  ;;  %v1383_v28 = vld [vmem:[#allocation5 + $0xb8] ss:$0 sm:$0xff] }
0x1757   :  { %v814_v30 = vrot.slane %v811_v29, 6 }
0x1759   :  { %815 = vrot.lane.b32.xlu1 %v814_v30, %s1685_s1 }
0x17cb   :  { %v816_v32 = vpop.permute.xlu1 %815 }
0x17cc   :  { %1511 = vmatpush3.msk.msra.mxu0 %vm821_vm3, %v816_v32 }
0x17cd   :  { %1513 = vmatmul.mubr.msk.f32.vlgmr.msra.gmra.mxu0 %vm817_vm4, %v812_v31  ;;  %1526 = vmatprep.subr.mxu0 %v1681_v15 }
0x17ce   :  { %1528 = vmatprep.mubr.msk.f32.mxu0 %vm1682_vm1, %v1681_v15 }
0x188d   :  { %v890_v34 = vpop.f32.mrf.mxu0 }
0x188e   :  { %1524 = vmatmul.mubr.msk.f32.vlgmr.msra.gmra.mxu1 %vm227_vm2, %v890_v34 }
0x188f   :  { %v1514_v36 = vpop.f32.mrf.mxu0  ;;  %1533 = vmatprep.mubr.msk.f32.mxu1 %vm1682_vm1, %v1681_v15 }
0x194e   :  { %v967_v35 = vpop.f32.mrf.mxu1 }
0x194f   :  { %v972_v39 = vmul.f32 %v971_v37, %v967_v35 }
0x1950   :  { %v1525_v40 = vpop.f32.mrf.mxu1 }
0x1951   :  { %974 = vrot.lane.b32.xlu0 %v972_v39, %s1686_s21 }
0x19c3   :  { %v975_v41 = vpop.permute.xlu0 %974 }
0x19c4   :  { %1527 = vmatpush3.xpose.msk.msra.mxu0 %vm227_vm2, %v975_v41 }
0x19c5   :  { %1536 = vmatprep.subr.mxu0 %v1681_v15 }
0x19c7   :  { %1529 = vmatmul.mubr.msk.f32.vlgmr.msra.gmra.mxu0 %vm227_vm2, %v972_v39 }
0x19c8   :  { %1538 = vmatprep.mubr.msk.f32.mxu0 %vm1682_vm1, %v1681_v15 }
0x1a87   :  { %v1046_v38 = vpop.f32.mrf.mxu0 }
0x1a88   :  { %v1050_v43 = vmul.f32 0.35355338, %v1046_v38 }
0x1a89   :  { %v1530_v44 = vpop.f32.mrf.mxu0 }
0x1a8a   :  { %v1052_v45 = vadd.f32 %v1051_v42, %v1050_v43 }
0x1a8c   :  { %v1054_v46 = vsel %vm1053_vm5, %v1052_v45, -inf }
0x1a8d   :  { %1055 = vmax.xlane.f32.xlu1 %v1054_v46 }
0x1b16   :  { %v1056_v47 = vpop.xlane.xlu1 %1055 }
0x1b17   :  { %v1057_v48 = vsub.f32 %v1052_v45, %v1056_v47 }
0x1b19   :  { %v1058_v49 = vmul.f32 1.442695, %v1057_v48 }
0x1b1b   :  { %1599 = vpow2.f32 %v1058_v49 }
0x1b28   :  { %v1600_v50 = vpop.eup %1599 }
0x1b29   :  { %v1060_v51 = vsel %vm1053_vm5, %v1600_v50, 0.0 }
0x1b2a   :  { %1061 = vadd.xlane.f32.xlu0 %v1060_v51 }
0x1b40   :  { %1065 = vrot.lane.b32.xlu0 %v972_v39, %s1684_s0 }
0x1bb3   :  { %v1062_v53 = vpop.xlane.xlu0 %1061 }
0x1bb4   :  { %1601 = vrcp.f32 %v1062_v53 }
0x1bb7   :  { %v1066_v54 = vpop.permute.xlu0 %1065 }
0x1bb8   :  { %1532 = vmatpush3.msra.mxu1 %v1066_v54 }
0x1bb9   :  { %1541 = vmatprep.subr.mxu1 %v1681_v15 }
0x1bc1   :  { %v1602_v55 = vpop.eup %1601 }
0x1bc2   :  { %v1064_v57 = vmul.f32 %v1602_v55, %v1600_v50 }
0x1bc4   :  { %1534 = vmatmul.mubr.msk.f32.vlgmr.msra.gmra.mxu1 %vm1053_vm5, %v1064_v57 }
0x1bc5   :  { %1549 = vmatprep.mubr.msk.f32.mxu1 %vm1682_vm1, %v1681_v15  ;;  %1542 = vmatpush3.msra.mxu1 %v1247_v61 }
0x1bc6   :  { %1543 = vmatprep.subr.mxu1 %v1681_v15 }
0x1bc7   :  { %1544 = vmatpush3.msra.mxu1 %v1246_v62 }
0x1bc8   :  { %1545 = vmatprep.subr.mxu1 %v1681_v15 }
0x1bc9   :  { %1546 = vmatpush3.msra.mxu1 %v1245_v63 }
0x1bca   :  { %1547 = vmatprep.subr.mxu1 %v1681_v15 }
0x1bcb   :  { %1548 = vmatpush3.msra.mxu1 %v1244_v0 }
0x1c84   :  { %v1137_v59 = vpop.f32.mrf.mxu1 }
0x1c85   :  { %1537 = vmatpush3.msra.mxu0 %v1137_v59 }
0x1c86   :  { %v1535_v60 = vpop.f32.mrf.mxu1  ;;  %1539 = vmatmul.mubr.msk.f32.vlgmr.msra.gmra.mxu0 %vm1053_vm5, %v1141_v58 }
0x1d46   :  { %v1211_v1 = vpop.f32.mrf.mxu0 }
0x1d47   :  { %v1216_v2 = vmul.f32 0.70710677, %v1211_v1  ;;  %v1215_v56 = vmul.f32 0.5, %v1211_v1 }
0x1d48   :  { %v1540_v3 = vpop.f32.mrf.mxu0 }
0x1d49   :  { %v1217_v4 = vand.u32 2147483647, %v1216_v2  ;;  %vm1239_vm6 = vcmp.ge.f32.partialorder %v1216_v2, 0.0 }
0x1d4b   :  { %v1218_v5 = vmul.f32 0.3275911, %v1217_v4  ;;  %v1233_v6 = vsub.f32 0.0, %v1217_v4 }
0x1d4d   :  { %v1219_v52 = vadd.f32 1.0, %v1218_v5  ;;  %v1234_v7 = vmul.f32 %v1233_v6, %v1217_v4 }
0x1d4f   :  { %1603 = vrcp.f32 %v1219_v52  ;;  %v1235_v8 = vmul.f32 1.442695, %v1234_v7 }
0x1d51   :  { %1605 = vpow2.f32 %v1235_v8 }
0x1d5c   :  { %v1604_v9 = vpop.eup %1603 }
0x1d5d   :  { %v1222_v10 = vmul.f32 %v1604_v9, %v1604_v9  ;;  %v1227_v11 = vmul.f32 -1.4531521, %v1604_v9  ;;  %v1223_v15 = vmul.f32 0.2548296, %v1604_v9 }
0x1d5e   :  { %v1606_v21 = vpop.eup %1605 }
0x1d5f   :  { %v1224_v12 = vmul.f32 -0.28449672, %v1222_v10  ;;  %v1228_v13 = vadd.f32 1.4214138, %v1227_v11  ;;  %v1229_v14 = vmul.f32 1.0614054, %v1222_v10  ;;  %v1226_v16 = vmul.f32 %v1604_v9, %v1222_v10 }
0x1d61   :  { %v1230_v17 = vadd.f32 %v1229_v14, %v1228_v13  ;;  %v1225_v18 = vadd.f32 %v1224_v12, %v1223_v15 }
0x1d63   :  { %v1231_v19 = vmul.f32 %v1230_v17, %v1226_v16 }
0x1d65   :  { %v1232_v20 = vadd.f32 %v1231_v19, %v1225_v18 }
0x1d67   :  { %v1237_v22 = vmul.f32 %v1606_v21, %v1232_v20 }
0x1d69   :  { %v1238_v23 = vsub.f32 1.0, %v1237_v22 }
0x1d6b   :  { %v1240_v24 = vsub.f32 0.0, %v1238_v23 }
0x1d6d   :  { %v1241_v25 = vsel %vm1239_vm6, %v1238_v23, %v1240_v24 }
0x1d6e   :  { %v1242_v26 = vadd.f32 1.0, %v1241_v25 }
0x1d70   :  { %v1243_v27 = vmul.f32 %v1242_v26, %v1215_v56 }
0x1d72   :  { %1550 = vmatmul.mubr.msk.f32.vlgmr.msra.gmra.mxu1 %vm227_vm2, %v1243_v27 }
0x1e32   :  { %v1322_v29 = vpop.f32.mrf.mxu1 }
0x1e33   :  { %v1323_v30 = vadd.f32 %v1383_v28, %v1322_v29 }
0x1e34   :  { %v1551_v31 = vpop.f32.mrf.mxu1 }
0x1e35   :  { %v1327_v32 = vsel %vm1326_vm7, %v1323_v30, -inf }
0x1e36   :  { %v1328_v33 = vrot.slane %v1327_v32, 4 }
0x1e38   :  { %v1329_v34 = vmax.f32 %v1327_v32, %v1328_v33 }
0x1e3a   :  { %v1330_v36 = vrot.slane %v1329_v34, 2 }
0x1e3c   :  { %v1331_v37 = vmax.f32 %v1329_v34, %v1330_v36 }
0x1e3e   :  { %v1332_v35 = vrot.slane %v1331_v37, 1 }
0x1e40   :  { %v1333_v39 = vmax.f32 %v1331_v37, %v1332_v35 }
0x1e42   :  { %v1334_v40 = vsub.f32 %v1323_v30, %v1333_v39 }
0x1e44   :  { %v1335_v41 = vmul.f32 1.442695, %v1334_v40 }
0x1e46   :  { %1607 = vpow2.f32 %v1335_v41 }
0x1e53   :  { %v1608_v38 = vpop.eup %1607 }
0x1e54   :  { %v1337_v42 = vsel %vm1326_vm7, %v1608_v38, 0.0 }
0x1e55   :  { %v1338_v43 = vrot.slane %v1337_v42, 4 }
0x1e57   :  { %v1339_v44 = vadd.f32 %v1338_v43, %v1337_v42 }
0x1e59   :  { %v1340_v45 = vrot.slane %v1339_v44, 2 }
0x1e5b   :  { %v1341_v46 = vadd.f32 %v1340_v45, %v1339_v44 }
0x1e5d   :  { %v1342_v47 = vrot.slane %v1341_v46, 1 }
0x1e5f   :  { %v1343_v48 = vadd.f32 %v1342_v47, %v1341_v46 }
0x1e61   :  { %1609 = vrcp.f32 %v1343_v48 }
0x1e6e   :  { %v1610_v49 = vpop.eup %1609 }
0x1e6f   :  { %v1345_v50 = vmul.f32 %v1610_v49, %v1608_v38 }
0x1e71   :  { %1346 = vst.msk [vmem:[#allocation7] sm:$0x3] %vm1326_vm7, %v1345_v50 }
0x1e72   :  { %1662 = shalt.err (!%p1659_p0)
}
0x1e73   :  { %1356 = dma.vmem_to_hbm [thread:$0]  %s1354_s23, 32, %s1863_s2, [#allocation4]  }
0x1e74   :  { %1675 = dma.done.wait [#allocation4], 32  }
0x1e75   :  { %1676 = vsyncadd [#allocation4], 4294967264 }
0x1e76   :  { %1360 = vsyncpa [#allocation3], 1 }
0x1e77   :  { %1361 = vsyncpa [#allocation6], 1 }
0x1e78   :  { %1362 = vsyncpa [#allocation4], 1 }

</bundles_post_ra>
